<compile_context>
chip_gen: v5e
topology: v5e:2x2
jax: 0.10.0
libtpu: 0.0.40
codegen_flags: <defaults>
</compile_context>

<pallas_src>
import functools

import jax
import jax.numpy as jnp
from jax import lax
from jax.experimental import pallas as pl
from jax.experimental.pallas import tpu as pltpu

BN_EPS = 1e-5


# ---------------------------------------------------------------------------
# Kernel
# ---------------------------------------------------------------------------
def residual_block_kernel(x_ref, wa_ref, ga_ref, bta_ref,
                          wb_ref, gb_ref, btb_ref,
                          fold_ref, expand_ref,
                          *rest, H: int, use_proj: bool):
    if use_proj:
        w1_ref, b1_ref, out_ref = rest
    else:
        (out_ref,) = rest

    x = x_ref[...]                            # (R, W*Cin) f32, R = N*H
    R = x.shape[0]
    fold = fold_ref[...]                      # (W*Cout, Cout): lanes -> channels
    expand = expand_ref[...]                  # (Cout, W*Cout): channels -> lanes
    W = fold.shape[0] // fold.shape[1]
    count = R * W                             # N*H*W (static python int)

    # Boundary masks for H-direction "same" padding, built once and reused by
    # both convs.  They also zero the circular wrap of pltpu.roll and any
    # cross-image leakage (row r belongs to image r // H).
    h = lax.broadcasted_iota(jnp.int32, (R, 1), 0) % H
    has_up = h != 0              # row has a valid h-1 neighbour
    has_dn = h != (H - 1)        # row has a valid h+1 neighbour

    def conv3x3(v, w_ref):
        # h-1 / h+1 rows via sublane rolls (XLU) + masks — no (R,R) shift matmuls.
        vm = jnp.where(has_up, pltpu.roll(v, shift=1, axis=0), 0.0)      # row h-1
        vp = jnp.where(has_dn, pltpu.roll(v, shift=R - 1, axis=0), 0.0)  # row h+1
        # K-stack the three dy taps -> a single MXU matmul (K = 3*W*Cin).
        vcat = jnp.concatenate([vm, v, vp], axis=-1).astype(w_ref.dtype)
        return jnp.dot(vcat, w_ref[...], preferred_element_type=jnp.float32)

    def bn(y, g_ref, bt_ref, relu):
        # Training-mode BatchNorm fused into one per-channel scale/shift.
        # Both channel moments come from ONE fold matmul on the sublane-aligned
        # stack [y ; y*y] (2 tiny matmuls -> 1 per BN).
        yy = jnp.concatenate([y, y * y], axis=0)                       # (2R, W*C)
        z = jnp.dot(yy, fold, preferred_element_type=jnp.float32)      # (2R, C)
        mean = jnp.sum(z[:R], axis=0, keepdims=True) / count           # (1, C)
        var = jnp.sum(z[R:], axis=0, keepdims=True) / count - mean * mean
        # TODO(synk): switch to centered / Welford variance before scaling up or
        #             moving activations to bf16 (one-pass E[y^2]-E[y]^2 cancels).
        scale = g_ref[...] * lax.rsqrt(var + BN_EPS)                   # (1, C)
        shift = bt_ref[...] - scale * mean
        scale_b = jnp.dot(scale, expand, preferred_element_type=jnp.float32)
        shift_b = jnp.dot(shift, expand, preferred_element_type=jnp.float32)
        out = scale_b * y + shift_b
        return jnp.maximum(out, 0.0) if relu else out

    # conv_a + bn_a + relu (conv bias cancels exactly under training-mode BN).
    a = bn(conv3x3(x, wa_ref), ga_ref, bta_ref, relu=True)
    # conv_b + bn_b.
    b = bn(conv3x3(a, wb_ref), gb_ref, btb_ref, relu=False)

    # Residual path.
    if use_proj:
        res = jnp.dot(x.astype(w1_ref.dtype), w1_ref[...],
                      preferred_element_type=jnp.float32) + b1_ref[...]
    else:
        res = x                   # Cin == Cout: identity residual, 1x1 conv skipped.

    out_ref[...] = jnp.maximum(b + res, 0.0)          # lane-dense (R, W*Cout) store


# ---------------------------------------------------------------------------
# One-time weight preparation (cache this — do NOT rebuild per forward)
# ---------------------------------------------------------------------------
def _stacked_banded_weights(w_hwio, W, dtype):
    """(3,3,Cin,Cout) HWIO -> (3*W*Cin, W*Cout).

    The W-direction "same" padding is encoded in the band structure
    (out-of-range dx taps are zero); the three dy taps are K-stacked so the
    kernel needs a single matmul per conv.
    """
    w = w_hwio.astype(jnp.float32)
    taps = []
    for dy in range(3):
        taps.append(sum(jnp.kron(jnp.eye(W, k=1 - dx, dtype=jnp.float32), w[dy, dx])
                        for dx in range(3)))
    return jnp.concatenate(taps, axis=0).astype(dtype)      # order: dy = -1, 0, +1


def prepare_params(params, W, mxu_dtype=jnp.float32):
    """Kernel-ready weights. `mxu_dtype=jnp.bfloat16` is the fast path on
    v6e/v7x MXUs (accumulation stays f32); f32 keeps the tightest numerics."""
    Cout = params["wa"].shape[-1]
    fold = jnp.kron(jnp.ones((W, 1), jnp.float32), jnp.eye(Cout, dtype=jnp.float32))
    prep = {
        "wa": _stacked_banded_weights(params["wa"], W, mxu_dtype),
        "wb": _stacked_banded_weights(params["wb"], W, mxu_dtype),
        "ga": params["ga"].reshape(1, Cout).astype(jnp.float32),
        "bta": params["bta"].reshape(1, Cout).astype(jnp.float32),
        "gb": params["gb"].reshape(1, Cout).astype(jnp.float32),
        "btb": params["btb"].reshape(1, Cout).astype(jnp.float32),
        "fold": fold,              # (W*Cout, Cout)
        "expand": fold.T,          # (Cout, W*Cout)
    }
    if "w1" in params:             # 1x1 projection only used when Cin != Cout
        prep["w1big"] = jnp.kron(jnp.eye(W, dtype=jnp.float32),
                                 params["w1"].astype(jnp.float32)).astype(mxu_dtype)
        prep["b1row"] = jnp.tile(params["b1"].astype(jnp.float32), W).reshape(1, W * Cout)
    return prep


# ---------------------------------------------------------------------------
# Wrappers
# ---------------------------------------------------------------------------
def residual_block_slab(x2d, prep, *, H):
    """Forward on the lane-dense slab: (N*H, W*Cin) -> (N*H, W*Cout)."""
    R, _ = x2d.shape
    Cout = prep["fold"].shape[1]
    W = prep["fold"].shape[0] // Cout
    use_proj = "w1big" in prep

    args = [x2d.astype(jnp.float32),
            prep["wa"], prep["ga"], prep["bta"],
            prep["wb"], prep["gb"], prep["btb"],
            prep["fold"], prep["expand"]]
    if use_proj:
        args += [prep["w1big"], prep["b1row"]]

    vmem = pl.BlockSpec(memory_space=pltpu.MemorySpace.VMEM)
    return pl.pallas_call(
        functools.partial(residual_block_kernel, H=H, use_proj=use_proj),
        out_shape=jax.ShapeDtypeStruct((R, W * Cout), jnp.float32),
        in_specs=[vmem] * len(args),
        out_specs=vmem,
        compiler_params=pltpu.CompilerParams(vmem_limit_bytes=32 * 1024 * 1024),
    )(*args)


def residual_block(x_nchw, prep):
    """PyTorch-interface forward: (N, Cin, H, W) -> (N, Cout, H, W)."""
    N, Cin, H, W = x_nchw.shape
    Cout = prep["fold"].shape[1]
    # Layout plumbing at the module boundary only.
    # TODO(synk): in a stacked model keep activations in the (N*H, W*C) slab
    #             layout across blocks so these two full-tensor transposes vanish.
    x2d = jnp.transpose(x_nchw, (0, 2, 3, 1)).astype(jnp.float32).reshape(N * H, W * Cin)
    out2d = residual_block_slab(x2d, prep, H=H)
    return jnp.transpose(out2d.reshape(N, H, W, Cout), (0, 3, 1, 2))


# ---------------------------------------------------------------------------
# Params + pure-JAX reference (mirrors the PyTorch forward, training-mode BN)
# ---------------------------------------------------------------------------
def make_params(key, channels_in, channels_out):
    ks = jax.random.split(key, 10)
    p = {
        "wa": 0.1 * jax.random.normal(ks[0], (3, 3, channels_in, channels_out), jnp.float32),
        "ba": 0.1 * jax.random.normal(ks[1], (channels_out,), jnp.float32),
        "ga": 1.0 + 0.1 * jax.random.normal(ks[2], (channels_out,), jnp.float32),
        "bta": 0.1 * jax.random.normal(ks[3], (channels_out,), jnp.float32),
        "wb": 0.1 * jax.random.normal(ks[4], (3, 3, channels_out, channels_out), jnp.float32),
        "bb": 0.1 * jax.random.normal(ks[5], (channels_out,), jnp.float32),
        "gb": 1.0 + 0.1 * jax.random.normal(ks[6], (channels_out,), jnp.float32),
        "btb": 0.1 * jax.random.normal(ks[7], (channels_out,), jnp.float32),
    }
    if channels_in != channels_out:
        p["w1"] = 0.1 * jax.random.normal(ks[8], (channels_in, channels_out), jnp.float32)
        p["b1"] = 0.1 * jax.random.normal(ks[9], (channels_out,), jnp.float32)
    return p


def reference_residual_block(x_nchw, params):
    x = jnp.transpose(x_nchw, (0, 2, 3, 1)).astype(jnp.float32)

    def conv3x3(x, w, b):
        y = lax.conv_general_dilated(
            x, w, window_strides=(1, 1), padding="SAME",
            dimension_numbers=("NHWC", "HWIO", "NHWC"))
        return y + b

    def bn(x, g, bt):
        m = jnp.mean(x, axis=(0, 1, 2), keepdims=True)
        v = jnp.mean((x - m) ** 2, axis=(0, 1, 2), keepdims=True)
        return g * (x - m) * lax.rsqrt(v + BN_EPS) + bt

    a = jnp.maximum(bn(conv3x3(x, params["wa"], params["ba"]),
                       params["ga"], params["bta"]), 0.0)
    b = bn(conv3x3(a, params["wb"], params["bb"]), params["gb"], params["btb"])
    if "w1" in params:
        res = jnp.einsum("nhwc,cd->nhwd", x, params["w1"]) + params["b1"]
    else:
        res = x
    out = jnp.maximum(b + res, 0.0)
    return jnp.transpose(out, (0, 3, 1, 2))


if __name__ == "__main__":
    N, H, W = 2, 16, 16
    key = jax.random.PRNGKey(0)
    kx1, kx2, kp1, kp2 = jax.random.split(key, 4)

    # Case 1: channels_in != channels_out -> residual through the 1x1 projection.
    x1 = jax.random.normal(kx1, (N, 4, H, W), jnp.float32)
    p1 = make_params(kp1, 4, 8)
    prep1 = prepare_params(p1, W)                      # cached weight transforms
    out1 = jax.block_until_ready(residual_block(x1, prep1))
    ref1 = reference_residual_block(x1, p1)
    assert out1.shape == (N, 8, H, W)
    assert jnp.allclose(out1, ref1, atol=1e-4, rtol=1e-4), "mismatch vs reference (4->8, f32)"

    # Case 2: channels_in == channels_out -> identity residual, 1x1 conv skipped.
    x2 = jax.random.normal(kx2, (N, 8, H, W), jnp.float32)
    p2 = make_params(kp2, 8, 8)
    prep2 = prepare_params(p2, W)
    out2 = jax.block_until_ready(residual_block(x2, prep2))
    ref2 = reference_residual_block(x2, p2)
    assert jnp.allclose(out2, ref2, atol=1e-4, rtol=1e-4), "mismatch vs reference (8->8, f32)"

    # Case 3: bf16 MXU operands (v6e/v7x fast path) with f32 accumulation and f32
    # BN/elementwise math; tolerance widened to the bf16 quantization level.
    prep1_bf16 = prepare_params(p1, W, mxu_dtype=jnp.bfloat16)
    out3 = jax.block_until_ready(residual_block(x1, prep1_bf16))
    assert jnp.allclose(out3, ref1, atol=5e-2, rtol=5e-2), "mismatch vs reference (4->8, bf16 MXU)"

    print("KERNEL_OK")
</pallas_src>

<mosaic_0001>
module attributes {stable_mosaic.version = 11 : i64} {
  func.func @residual_block_kernel(%arg0: memref<32x64xf32, #tpu.memory_space<vmem>>, %arg1: memref<192x128xf32, #tpu.memory_space<vmem>>, %arg2: memref<1x8xf32, #tpu.memory_space<vmem>>, %arg3: memref<1x8xf32, #tpu.memory_space<vmem>>, %arg4: memref<384x128xf32, #tpu.memory_space<vmem>>, %arg5: memref<1x8xf32, #tpu.memory_space<vmem>>, %arg6: memref<1x8xf32, #tpu.memory_space<vmem>>, %arg7: memref<128x8xf32, #tpu.memory_space<vmem>>, %arg8: memref<8x128xf32, #tpu.memory_space<vmem>>, %arg9: memref<64x128xf32, #tpu.memory_space<vmem>>, %arg10: memref<1x128xf32, #tpu.memory_space<vmem>>, %arg11: memref<32x128xf32, #tpu.memory_space<vmem>>) attributes {dimension_semantics = [], scalar_prefetch = 0 : i64, scratch_operands = 0 : i64, tpu.core_type = #tpu.core_type<tc>} {
    %c0 = arith.constant 0 : index
    %c0_0 = arith.constant 0 : index
    %0 = vector.load %arg0[%c0, %c0_0] : memref<32x64xf32, #tpu.memory_space<vmem>>, vector<32x64xf32>
    %c0_1 = arith.constant 0 : index
    %c0_2 = arith.constant 0 : index
    %1 = vector.load %arg7[%c0_1, %c0_2] : memref<128x8xf32, #tpu.memory_space<vmem>>, vector<128x8xf32>
    %c0_3 = arith.constant 0 : index
    %c0_4 = arith.constant 0 : index
    %2 = vector.load %arg8[%c0_3, %c0_4] : memref<8x128xf32, #tpu.memory_space<vmem>>, vector<8x128xf32>
    %3 = tpu.iota {dimensions = array<i32: 0>} : vector<32x1xi32>
    %c16_i32 = arith.constant 16 : i32
    %c0_i32 = arith.constant 0 : i32
    %4 = arith.cmpi eq, %c16_i32, %c0_i32 : i32
    %c1_i32 = arith.constant 1 : i32
    %5 = arith.select %4, %c1_i32, %c16_i32 : i32
    %6 = vector.broadcast %5 : i32 to vector<32x1xi32>
    %7 = arith.remsi %3, %6 : vector<32x1xi32>
    %c0_i32_5 = arith.constant 0 : i32
    %8 = vector.broadcast %c0_i32_5 : i32 to vector<32x1xi32>
    %9 = arith.cmpi ne, %7, %8 : vector<32x1xi32>
    %c0_i32_6 = arith.constant 0 : i32
    %10 = vector.broadcast %c0_i32_6 : i32 to vector<32x1xi32>
    %11 = arith.cmpi slt, %7, %10 : vector<32x1xi32>
    %c0_i32_7 = arith.constant 0 : i32
    %12 = arith.cmpi slt, %5, %c0_i32_7 : i32
    %13 = vector.broadcast %12 : i1 to vector<32x1xi1>
    %14 = vector.broadcast %13 : vector<32x1xi1> to vector<32x1xi1>
    %15 = arith.xori %11, %14 : vector<32x1xi1>
    %16 = arith.andi %15, %9 : vector<32x1xi1>
    %17 = vector.broadcast %5 : i32 to vector<32x1xi32>
    %18 = arith.addi %7, %17 : vector<32x1xi32>
    %19 = arith.select %16, %18, %7 : vector<32x1xi1>, vector<32x1xi32>
    %c0_i32_8 = arith.constant 0 : i32
    %20 = vector.broadcast %c0_i32_8 : i32 to vector<32x1xi32>
    %21 = arith.cmpi ne, %19, %20 : vector<32x1xi32>
    %c15_i32 = arith.constant 15 : i32
    %22 = vector.broadcast %c15_i32 : i32 to vector<32x1xi32>
    %23 = arith.cmpi ne, %19, %22 : vector<32x1xi32>
    %c1_i32_9 = arith.constant 1 : i32
    %24 = tpu.dynamic_rotate %0 by %c1_i32_9 dim 0 : vector<32x64xf32>, i32 -> vector<32x64xf32>
    %cst = arith.constant 0.000000e+00 : f32
    %25 = vector.shape_cast %21 : vector<32x1xi1> to vector<32x1xi1>
    %26 = vector.broadcast %25 : vector<32x1xi1> to vector<32x64xi1>
    %27 = vector.broadcast %cst : f32 to vector<32x64xf32>
    %28 = arith.select %26, %24, %27 : vector<32x64xi1>, vector<32x64xf32>
    %c31_i32 = arith.constant 31 : i32
    %29 = tpu.dynamic_rotate %0 by %c31_i32 dim 0 : vector<32x64xf32>, i32 -> vector<32x64xf32>
    %cst_10 = arith.constant 0.000000e+00 : f32
    %30 = vector.shape_cast %23 : vector<32x1xi1> to vector<32x1xi1>
    %31 = vector.broadcast %30 : vector<32x1xi1> to vector<32x64xi1>
    %32 = vector.broadcast %cst_10 : f32 to vector<32x64xf32>
    %33 = arith.select %31, %29, %32 : vector<32x64xi1>, vector<32x64xf32>
    %34 = tpu.concatenate %28, %0, %33 in 1 : vector<32x64xf32>, vector<32x64xf32>, vector<32x64xf32> -> vector<32x192xf32>
    %c0_11 = arith.constant 0 : index
    %c0_12 = arith.constant 0 : index
    %35 = vector.load %arg1[%c0_11, %c0_12] : memref<192x128xf32, #tpu.memory_space<vmem>>, vector<192x128xf32>
    %cst_13 = arith.constant dense<0.000000e+00> : vector<32x128xf32>
    %36 = tpu.matmul %34, %35, %cst_13 {dimension_numbers = #tpu.dot_dimension_numbers<[1], [0], [0], [1], [0, 0, 1, 1], [], []>} : vector<32x192xf32>, vector<192x128xf32>, vector<32x128xf32> -> vector<32x128xf32>
    %37 = arith.mulf %36, %36 : vector<32x128xf32>
    %38 = tpu.concatenate %36, %37 in 0 : vector<32x128xf32>, vector<32x128xf32> -> vector<64x128xf32>
    %cst_14 = arith.constant dense<0.000000e+00> : vector<64x8xf32>
    %39 = tpu.matmul %38, %1, %cst_14 {dimension_numbers = #tpu.dot_dimension_numbers<[1], [0], [0], [1], [0, 0, 1, 1], [], []>} : vector<64x128xf32>, vector<128x8xf32>, vector<64x8xf32> -> vector<64x8xf32>
    %40 = vector.extract_strided_slice %39 {offsets = [0, 0], sizes = [32, 8], strides = [1, 1]} : vector<64x8xf32> to vector<32x8xf32>
    %cst_15 = arith.constant dense<0.000000e+00> : vector<8xf32>
    %41 = vector.multi_reduction <add>, %40, %cst_15 [0] : vector<32x8xf32> to vector<8xf32>
    %42 = vector.shape_cast %41 : vector<8xf32> to vector<1x8xf32>
    %cst_16 = arith.constant 5.120000e+02 : f32
    %43 = vector.broadcast %cst_16 : f32 to vector<1x8xf32>
    %44 = arith.divf %42, %43 : vector<1x8xf32>
    %45 = vector.extract_strided_slice %39 {offsets = [32, 0], sizes = [32, 8], strides = [1, 1]} : vector<64x8xf32> to vector<32x8xf32>
    %cst_17 = arith.constant dense<0.000000e+00> : vector<8xf32>
    %46 = vector.multi_reduction <add>, %45, %cst_17 [0] : vector<32x8xf32> to vector<8xf32>
    %47 = vector.shape_cast %46 : vector<8xf32> to vector<1x8xf32>
    %cst_18 = arith.constant 5.120000e+02 : f32
    %48 = vector.broadcast %cst_18 : f32 to vector<1x8xf32>
    %49 = arith.divf %47, %48 : vector<1x8xf32>
    %50 = arith.mulf %44, %44 : vector<1x8xf32>
    %51 = arith.subf %49, %50 : vector<1x8xf32>
    %c0_19 = arith.constant 0 : index
    %c0_20 = arith.constant 0 : index
    %52 = vector.load %arg2[%c0_19, %c0_20] : memref<1x8xf32, #tpu.memory_space<vmem>>, vector<1x8xf32>
    %cst_21 = arith.constant 9.99999974E-6 : f32
    %53 = vector.broadcast %cst_21 : f32 to vector<1x8xf32>
    %54 = arith.addf %51, %53 : vector<1x8xf32>
    %55 = math.rsqrt %54 : vector<1x8xf32>
    %56 = arith.mulf %52, %55 : vector<1x8xf32>
    %c0_22 = arith.constant 0 : index
    %c0_23 = arith.constant 0 : index
    %57 = vector.load %arg3[%c0_22, %c0_23] : memref<1x8xf32, #tpu.memory_space<vmem>>, vector<1x8xf32>
    %58 = arith.mulf %56, %44 : vector<1x8xf32>
    %59 = arith.subf %57, %58 : vector<1x8xf32>
    %cst_24 = arith.constant dense<0.000000e+00> : vector<1x128xf32>
    %60 = tpu.matmul %56, %2, %cst_24 {dimension_numbers = #tpu.dot_dimension_numbers<[1], [0], [0], [1], [0, 0, 1, 1], [], []>} : vector<1x8xf32>, vector<8x128xf32>, vector<1x128xf32> -> vector<1x128xf32>
    %cst_25 = arith.constant dense<0.000000e+00> : vector<1x128xf32>
    %61 = tpu.matmul %59, %2, %cst_25 {dimension_numbers = #tpu.dot_dimension_numbers<[1], [0], [0], [1], [0, 0, 1, 1], [], []>} : vector<1x8xf32>, vector<8x128xf32>, vector<1x128xf32> -> vector<1x128xf32>
    %62 = vector.broadcast %60 : vector<1x128xf32> to vector<32x128xf32>
    %63 = arith.mulf %62, %36 : vector<32x128xf32>
    %64 = vector.broadcast %61 : vector<1x128xf32> to vector<32x128xf32>
    %65 = arith.addf %63, %64 : vector<32x128xf32>
    %cst_26 = arith.constant 0.000000e+00 : f32
    %66 = vector.broadcast %cst_26 : f32 to vector<32x128xf32>
    %67 = arith.maximumf %65, %66 : vector<32x128xf32>
    %c1_i32_27 = arith.constant 1 : i32
    %68 = tpu.dynamic_rotate %67 by %c1_i32_27 dim 0 : vector<32x128xf32>, i32 -> vector<32x128xf32>
    %cst_28 = arith.constant 0.000000e+00 : f32
    %69 = vector.shape_cast %21 : vector<32x1xi1> to vector<32x1xi1>
    %70 = vector.broadcast %69 : vector<32x1xi1> to vector<32x128xi1>
    %71 = vector.broadcast %cst_28 : f32 to vector<32x128xf32>
    %72 = arith.select %70, %68, %71 : vector<32x128xi1>, vector<32x128xf32>
    %c31_i32_29 = arith.constant 31 : i32
    %73 = tpu.dynamic_rotate %67 by %c31_i32_29 dim 0 : vector<32x128xf32>, i32 -> vector<32x128xf32>
    %cst_30 = arith.constant 0.000000e+00 : f32
    %74 = vector.shape_cast %23 : vector<32x1xi1> to vector<32x1xi1>
    %75 = vector.broadcast %74 : vector<32x1xi1> to vector<32x128xi1>
    %76 = vector.broadcast %cst_30 : f32 to vector<32x128xf32>
    %77 = arith.select %75, %73, %76 : vector<32x128xi1>, vector<32x128xf32>
    %78 = tpu.concatenate %72, %67, %77 in 1 : vector<32x128xf32>, vector<32x128xf32>, vector<32x128xf32> -> vector<32x384xf32>
    %c0_31 = arith.constant 0 : index
    %c0_32 = arith.constant 0 : index
    %79 = vector.load %arg4[%c0_31, %c0_32] : memref<384x128xf32, #tpu.memory_space<vmem>>, vector<384x128xf32>
    %cst_33 = arith.constant dense<0.000000e+00> : vector<32x128xf32>
    %80 = tpu.matmul %78, %79, %cst_33 {dimension_numbers = #tpu.dot_dimension_numbers<[1], [0], [0], [1], [0, 0, 1, 1], [], []>} : vector<32x384xf32>, vector<384x128xf32>, vector<32x128xf32> -> vector<32x128xf32>
    %81 = arith.mulf %80, %80 : vector<32x128xf32>
    %82 = tpu.concatenate %80, %81 in 0 : vector<32x128xf32>, vector<32x128xf32> -> vector<64x128xf32>
    %cst_34 = arith.constant dense<0.000000e+00> : vector<64x8xf32>
    %83 = tpu.matmul %82, %1, %cst_34 {dimension_numbers = #tpu.dot_dimension_numbers<[1], [0], [0], [1], [0, 0, 1, 1], [], []>} : vector<64x128xf32>, vector<128x8xf32>, vector<64x8xf32> -> vector<64x8xf32>
    %84 = vector.extract_strided_slice %83 {offsets = [0, 0], sizes = [32, 8], strides = [1, 1]} : vector<64x8xf32> to vector<32x8xf32>
    %cst_35 = arith.constant dense<0.000000e+00> : vector<8xf32>
    %85 = vector.multi_reduction <add>, %84, %cst_35 [0] : vector<32x8xf32> to vector<8xf32>
    %86 = vector.shape_cast %85 : vector<8xf32> to vector<1x8xf32>
    %cst_36 = arith.constant 5.120000e+02 : f32
    %87 = vector.broadcast %cst_36 : f32 to vector<1x8xf32>
    %88 = arith.divf %86, %87 : vector<1x8xf32>
    %89 = vector.extract_strided_slice %83 {offsets = [32, 0], sizes = [32, 8], strides = [1, 1]} : vector<64x8xf32> to vector<32x8xf32>
    %cst_37 = arith.constant dense<0.000000e+00> : vector<8xf32>
    %90 = vector.multi_reduction <add>, %89, %cst_37 [0] : vector<32x8xf32> to vector<8xf32>
    %91 = vector.shape_cast %90 : vector<8xf32> to vector<1x8xf32>
    %cst_38 = arith.constant 5.120000e+02 : f32
    %92 = vector.broadcast %cst_38 : f32 to vector<1x8xf32>
    %93 = arith.divf %91, %92 : vector<1x8xf32>
    %94 = arith.mulf %88, %88 : vector<1x8xf32>
    %95 = arith.subf %93, %94 : vector<1x8xf32>
    %c0_39 = arith.constant 0 : index
    %c0_40 = arith.constant 0 : index
    %96 = vector.load %arg5[%c0_39, %c0_40] : memref<1x8xf32, #tpu.memory_space<vmem>>, vector<1x8xf32>
    %cst_41 = arith.constant 9.99999974E-6 : f32
    %97 = vector.broadcast %cst_41 : f32 to vector<1x8xf32>
    %98 = arith.addf %95, %97 : vector<1x8xf32>
    %99 = math.rsqrt %98 : vector<1x8xf32>
    %100 = arith.mulf %96, %99 : vector<1x8xf32>
    %c0_42 = arith.constant 0 : index
    %c0_43 = arith.constant 0 : index
    %101 = vector.load %arg6[%c0_42, %c0_43] : memref<1x8xf32, #tpu.memory_space<vmem>>, vector<1x8xf32>
    %102 = arith.mulf %100, %88 : vector<1x8xf32>
    %103 = arith.subf %101, %102 : vector<1x8xf32>
    %cst_44 = arith.constant dense<0.000000e+00> : vector<1x128xf32>
    %104 = tpu.matmul %100, %2, %cst_44 {dimension_numbers = #tpu.dot_dimension_numbers<[1], [0], [0], [1], [0, 0, 1, 1], [], []>} : vector<1x8xf32>, vector<8x128xf32>, vector<1x128xf32> -> vector<1x128xf32>
    %cst_45 = arith.constant dense<0.000000e+00> : vector<1x128xf32>
    %105 = tpu.matmul %103, %2, %cst_45 {dimension_numbers = #tpu.dot_dimension_numbers<[1], [0], [0], [1], [0, 0, 1, 1], [], []>} : vector<1x8xf32>, vector<8x128xf32>, vector<1x128xf32> -> vector<1x128xf32>
    %106 = vector.broadcast %104 : vector<1x128xf32> to vector<32x128xf32>
    %107 = arith.mulf %106, %80 : vector<32x128xf32>
    %108 = vector.broadcast %105 : vector<1x128xf32> to vector<32x128xf32>
    %109 = arith.addf %107, %108 : vector<32x128xf32>
    %c0_46 = arith.constant 0 : index
    %c0_47 = arith.constant 0 : index
    %110 = vector.load %arg9[%c0_46, %c0_47] : memref<64x128xf32, #tpu.memory_space<vmem>>, vector<64x128xf32>
    %cst_48 = arith.constant dense<0.000000e+00> : vector<32x128xf32>
    %111 = tpu.matmul %0, %110, %cst_48 {dimension_numbers = #tpu.dot_dimension_numbers<[1], [0], [0], [1], [0, 0, 1, 1], [], []>} : vector<32x64xf32>, vector<64x128xf32>, vector<32x128xf32> -> vector<32x128xf32>
    %c0_49 = arith.constant 0 : index
    %c0_50 = arith.constant 0 : index
    %112 = vector.load %arg10[%c0_49, %c0_50] : memref<1x128xf32, #tpu.memory_space<vmem>>, vector<1x128xf32>
    %113 = vector.broadcast %112 : vector<1x128xf32> to vector<32x128xf32>
    %114 = arith.addf %111, %113 : vector<32x128xf32>
    %115 = arith.addf %109, %114 : vector<32x128xf32>
    %cst_51 = arith.constant 0.000000e+00 : f32
    %116 = vector.broadcast %cst_51 : f32 to vector<32x128xf32>
    %117 = arith.maximumf %115, %116 : vector<32x128xf32>
    %c0_52 = arith.constant 0 : index
    %c0_53 = arith.constant 0 : index
    %118 = vector.load %arg11[%c0_52, %c0_53] : memref<32x128xf32, #tpu.memory_space<vmem>>, vector<32x128xf32>
    tpu.vector_store %arg11[%c0_52, %c0_53], %117 {strides = array<i32>} : memref<32x128xf32, #tpu.memory_space<vmem>>, vector<32x128xf32>,
    return
  }
}

</mosaic_0001>

<bundles_post_ra>
// kernel: tpu_custom_call.1
= control target key start
LH: loop header
LB: loop body
LE: loop exit
PB: predicated region body
PF: predicated region fallthrough
CT: control target
= control target key end

     0   :  { %16 = vsyncpa [#allocation3], 0  ;;  %s1451_s0 = inlined_call_operand.vmem [shape: f32[32,64], index: 0, kind: input, shape index: {}]   ;;  %s1452_s1 = inlined_call_operand.hbm [shape: f32[192,128], index: 1, kind: input, shape index: {}]   ;;  %s1453_s2 = inlined_call_operand.vmem [shape: f32[1,8], index: 2, kind: input, shape index: {}]   ;;  %s1454_s3 = inlined_call_operand.vmem [shape: f32[1,8], index: 3, kind: input, shape index: {}]   ;;  %s1455_s4 = inlined_call_operand.hbm [shape: f32[384,128], index: 4, kind: input, shape index: {}]   ;;  %s1456_s5 = inlined_call_operand.vmem [shape: f32[1,8], index: 5, kind: input, shape index: {}]   ;;  %s1457_s6 = inlined_call_operand.vmem [shape: f32[1,8], index: 6, kind: input, shape index: {}]   ;;  %s1458_s7 = inlined_call_operand.vmem [shape: f32[128,8], index: 7, kind: input, shape index: {}]   ;;  %s1459_s8 = inlined_call_operand.vmem [shape: f32[8,128], index: 8, kind: input, shape index: {}]   ;;  %s1460_s9 = inlined_call_operand.vmem [shape: f32[64,128], index: 9, kind: input, shape index: {}]   ;;  %s1461_s10 = inlined_call_operand.vmem [shape: f32[1,128], index: 10, kind: input, shape index: {}]   ;;  %s1462_s11 = inlined_call_operand.hbm [shape: f32[32,128], index: 11, kind: output, shape index: {}]  }
   0x1   :  { %17 = vsyncpa [#allocation6], 0 }
   0x2   :  { %18 = vsyncpa [#allocation4], 0  ;;  %s25_s19 = sshll.u32 %s1452_s1, 4  ;;  %s996_s20 = smov [#allocation2]   ;;  %s26_s19 = int_to_ptr.hbm [resolvable:$true] %s25_s19 }
   0x3   :  { %s27_s21 = sshll.u32 %s996_s20, 4  ;;  %s42_s24 = sshll.u32 %s1455_s4, 4  ;;  %s28_s21 = int_to_ptr.vmem [resolvable:$true] %s27_s21  ;;  %s43_s24 = int_to_ptr.hbm [resolvable:$true] %s42_s24 }
   0x4   :  { %s997_s25 = smov 128   ;;  %s998_s26 = smov 8  }
   0x5   :  { %33 = dma.hbm_to_vmem [thread:$0]  %s26_s19, 3072, %s28_s21, [#allocation3], %s997_s25, %s997_s25, %s998_s26  }
   0x6   :  { %s999_s27 = smov [#allocation5]  }
   0x7   :  { %s44_s28 = sshll.u32 %s999_s27, 4  ;;  %s45_s28 = int_to_ptr.vmem [resolvable:$true] %s44_s28 }
   0x8   :  { %50 = dma.hbm_to_vmem [thread:$0]  %s43_s24, 6144, %s45_s28, [#allocation6], %s997_s25, %s997_s25, %s998_s26  }
   0x9   :  { %990 = dma.done.wait [#allocation3], 3072  }
   0xa   :  { %991 = vsyncadd [#allocation3], 4294964224 }
   0xb   :  { %992 = dma.done.wait [#allocation6], 6144  }
   0xc   :  { %993 = vsyncadd [#allocation6], 4294961152  ;;  %v1078_v0 = vld [vmem:[%s1451_s0] sm:$0xff]  ;;  %v1083_v1 = vld [vmem:[%s1451_s0 + $0x10] sm:$0xff]  ;;  %s1000_s12 = smov 64   ;;  %v92_v26 = vlaneseq  ;;  %vm211_vm0 = vcmask 523264  }
   0xd   :  { %199 = vrot.lane.b32.xlu0 %v1078_v0, %s1000_s12  ;;  %203 = vrot.lane.b32.xlu1 %v1083_v1, %s1000_s12  ;;  %v231_v2 = vld [vmem:[#allocation2 + $0x78] sm:$0xff]  ;;  %v230_v3 = vld [vmem:[#allocation2 + $0x70] sm:$0xff]  ;;  %v229_v4 = vld [vmem:[#allocation2 + $0x68] sm:$0xff]  ;;  %v174_v28 = vrot.slane %v1078_v0, 1  ;;  %v176_v35 = vrot.slane %v1083_v1, 1  ;;  %v153_v43 = vrot.slane %v1078_v0, 7 }
   0xe   :  { %252 = vmatpush.msra.mxu0 %v231_v2  ;;  %v239_v5 = vld [vmem:[#allocation2 + $0xb8] sm:$0xff]  ;;  %v228_v6 = vld [vmem:[#allocation2 + $0x60] sm:$0xff]  ;;  %v238_v7 = vld [vmem:[#allocation2 + $0xb0] sm:$0xff]  ;;  %v1099_v27 = vshrl.u32 %v92_v26, 7  ;;  %v155_v63 = vrot.slane %v1083_v1, 7  ;;  %vm355_vm7 = vcmask 64512  }
   0xf   :  { %289 = vmatpush.msra.mxu1 %v239_v5  ;;  %v1090_v8 = vld [vmem:[%s1451_s0 + $0x8] sm:$0xff]  ;;  %v1095_v9 = vld [vmem:[%s1451_s0 + $0x18] sm:$0xff]  ;;  %v226_v12 = vld [vmem:[#allocation2 + $0x50] sm:$0xff]  ;;  %s842_s30 = sshll.u32 %s1462_s11, 4  ;;  %s843_s30 = int_to_ptr.hbm [resolvable:$true] %s842_s30 }
  0x10   :  { %253 = vmatpush.msra.mxu0 %v230_v3  ;;  %v227_v10 = vld [vmem:[#allocation2 + $0x58] sm:$0xff]  ;;  %v237_v11 = vld [vmem:[#allocation2 + $0xa8] sm:$0xff]  ;;  %v236_v13 = vld [vmem:[#allocation2 + $0xa0] sm:$0xff]  ;;  %v175_v29 = vrot.slane %v1090_v8, 1  ;;  %vm178_vm1 = vcmp.lt.s32.totalorder %v1099_v27, 7  ;;  %v94_v33 = vadd.s32 8, %v1099_v27 }
  0x11   :  { %290 = vmatpush.msra.mxu1 %v238_v7  ;;  %v225_v14 = vld [vmem:[#allocation2 + $0x48] sm:$0xff]  ;;  %v235_v15 = vld [vmem:[#allocation2 + $0x98] sm:$0xff]  ;;  %v224_v16 = vld [vmem:[#allocation2 + $0x40] sm:$0xff]  ;;  %v177_v39 = vrot.slane %v1095_v9, 1  ;;  %v96_v41 = vadd.s32 24, %v1099_v27  ;;  %v156_v44 = vrot.slane %v1095_v9, 7 }
  0x12   :  { %254 = vmatpush.msra.mxu0 %v229_v4  ;;  %v234_v17 = vld [vmem:[#allocation2 + $0x90] sm:$0xff]  ;;  %v223_v18 = vld [vmem:[#allocation2 + $0x38] sm:$0xff]  ;;  %v233_v19 = vld [vmem:[#allocation2 + $0x88] sm:$0xff]  ;;  %v181_v32 = vsel %vm178_vm1, %v174_v28, %v175_v29  ;;  %v108_v34 = vand.u32 15, %v94_v33  ;;  %v180_v37 = vsel %vm178_vm1, %v175_v29, %v176_v35  ;;  %v101_v45 = vand.u32 15, %v1099_v27 }
  0x13   :  { %291 = vmatpush.msra.mxu1 %v237_v11  ;;  %v222_v20 = vld [vmem:[#allocation2 + $0x30] sm:$0xff]  ;;  %v221_v21 = vld [vmem:[#allocation2 + $0x28] sm:$0xff]  ;;  %v220_v22 = vld [vmem:[#allocation2 + $0x20] sm:$0xff]  ;;  %v179_v40 = vsel %vm178_vm1, %v176_v35, %v177_v39  ;;  %v122_v42 = vand.u32 15, %v96_v41  ;;  %vm157_vm3 = vcmp.lt.s32.totalorder %v1099_v27, 1  ;;  %v182_v47 = vsel %vm178_vm1, %v177_v39, %v174_v28 }
  0x14   :  { %255 = vmatpush.msra.mxu0 %v228_v6  ;;  %v219_v23 = vld [vmem:[#allocation2 + $0x18] sm:$0xff]  ;;  %v218_v24 = vld [vmem:[#allocation2 + $0x10] sm:$0xff]  ;;  %v217_v25 = vld [vmem:[#allocation2 + $0x8] sm:$0xff]  ;;  %vm1109_vm2 = vcmp.ne.s32.totalorder %v108_v34, 15  ;;  %vm1146_vm5 = vcmp.ne.s32.totalorder %v101_v45, 0  ;;  %v161_v52 = vsel %vm157_vm3, %v156_v44, %v153_v43  ;;  %v95_v59 = vadd.s32 16, %v1099_v27 }
  0x15   :  { %201 = vrot.lane.b32.xlu0 %v1090_v8, %s1000_s12  ;;  %205 = vrot.lane.b32.xlu1 %v1095_v9, %s1000_s12  ;;  %v216_v30 = vld [vmem:[#allocation2] sm:$0xff]  ;;  %v192_v38 = vsel %vm1109_vm2, %v180_v37, 0.0  ;;  %vm1127_vm4 = vcmp.ne.s32.totalorder %v122_v42, 15  ;;  %v1139_v49 = vld [vmem:[%s1458_s7 + $0x78] sm:$0xff]  ;;  %v1144_v50 = vld [vmem:[%s1458_s7 + $0x70] sm:$0xff]  ;;  %v170_v54 = vsel %vm1146_vm5, %v161_v52, 0.0 }
  0x16   :  { %256 = vmatpush.msra.mxu0 %v227_v10  ;;  %292 = vmatpush.msra.mxu1 %v236_v13  ;;  %v232_v31 = vld [vmem:[#allocation2 + $0x80] sm:$0xff]  ;;  %v194_v48 = vsel %vm1127_vm4, %v182_v47, 0.0  ;;  %v1156_v53 = vld [vmem:[%s1458_s7 + $0x68] sm:$0xff]  ;;  %v1170_v57 = vld [vmem:[%s1458_s7 + $0x58] sm:$0xff]  ;;  %v154_v60 = vrot.slane %v1090_v8, 7  ;;  %v115_v2 = vand.u32 15, %v95_v59 }
  0x17   :  { %314 = vmatpush.msra.mxu2 %v1139_v49  ;;  %v1164_v55 = vld [vmem:[%s1458_s7 + $0x60] sm:$0xff]  ;;  %v1179_v61 = vld [vmem:[%s1458_s7 + $0x50] sm:$0xff]  ;;  %v1185_v62 = vld [vmem:[%s1458_s7 + $0x48] sm:$0xff] }
  0x18   :  { %257 = vmatpush.msra.mxu0 %v226_v12  ;;  %293 = vmatpush.msra.mxu1 %v235_v15  ;;  %v160_v3 = vsel %vm157_vm3, %v153_v43, %v154_v60  ;;  %v1194_v4 = vld [vmem:[%s1458_s7 + $0x40] sm:$0xff]  ;;  %v1200_v6 = vld [vmem:[%s1458_s7 + $0x38] sm:$0xff]  ;;  %vm1203_vm6 = vcmp.ne.s32.totalorder %v115_v2, 0  ;;  %v159_v11 = vsel %vm157_vm3, %v154_v60, %v155_v63  ;;  %v1213_v13 = vld [vmem:[%s1458_s7 + $0x30] sm:$0xff] }
  0x19   :  { %315 = vmatpush.msra.mxu2 %v1144_v50  ;;  %v1221_v15 = vld [vmem:[%s1458_s7 + $0x28] sm:$0xff] }
  0x1a   :  { %258 = vmatpush.msra.mxu0 %v225_v14  ;;  %294 = vmatpush.msra.mxu1 %v234_v17  ;;  %v172_v14 = vsel %vm1203_vm6, %v159_v11, 0.0 }
  0x1b   :  { %316 = vmatpush.msra.mxu2 %v1156_v53 }
  0x1c   :  { %259 = vmatpush.msra.mxu0 %v224_v16  ;;  %295 = vmatpush.msra.mxu1 %v233_v19  ;;  %v1227_v16 = vld [vmem:[%s1458_s7 + $0x20] sm:$0xff]  ;;  %v1240_v19 = vld [vmem:[%s1458_s7 + $0x10] sm:$0xff] }
  0x1d   :  { %317 = vmatpush.msra.mxu2 %v1164_v55 }
  0x1e   :  { %260 = vmatpush.msra.mxu0 %v223_v18  ;;  %296 = vmatpush.msra.mxu1 %v232_v31  ;;  %v1234_v18 = vld [vmem:[%s1458_s7 + $0x18] sm:$0xff] }
  0x1f   :  { %856 = vmatmul.msk.f32.vlgmr.msra.gmra.mxu1 %vm211_vm0, %v181_v32  ;;  %318 = vmatpush.msra.mxu2 %v1170_v57 }
  0x20   :  { %261 = vmatpush.msra.mxu0 %v222_v20 }
  0x21   :  { %319 = vmatpush.msra.mxu2 %v1179_v61 }
  0x22   :  { %262 = vmatpush.msra.mxu0 %v221_v21  ;;  %v158_v21 = vsel %vm157_vm3, %v155_v63, %v156_v44 }
  0x23   :  { %320 = vmatpush.msra.mxu2 %v1185_v62 }
  0x24   :  { %263 = vmatpush.msra.mxu0 %v220_v22 }
  0x25   :  { %321 = vmatpush.msra.mxu2 %v1194_v4 }
  0x26   :  { %264 = vmatpush.msra.mxu0 %v219_v23  ;;  %v1250_v23 = vld [vmem:[%s1458_s7 + $0x8] sm:$0xff] }
  0x27   :  { %857 = vmatmul.msk.f32.gmra.mxu1 %vm211_vm0, %v192_v38  ;;  %322 = vmatpush.msra.mxu2 %v1200_v6 }
  0x28   :  { %265 = vmatpush.msra.mxu0 %v218_v24  ;;  %v1256_v24 = vld [vmem:[%s1458_s7] sm:$0xff] }
  0x29   :  { %323 = vmatpush.msra.mxu2 %v1213_v13 }
  0x2a   :  { %266 = vmatpush.msra.mxu0 %v217_v25 }
  0x2b   :  { %324 = vmatpush.msra.mxu2 %v1221_v15 }
  0x2c   :  { %267 = vmatpush.msra.mxu0 %v216_v30 }
  0x2d   :  { %325 = vmatpush.msra.mxu2 %v1227_v16 }
  0x2f   :  { %858 = vmatmul.msk.f32.gmra.mxu1 %vm211_vm0, %v179_v40  ;;  %326 = vmatpush.msra.mxu2 %v1234_v18 }
  0x31   :  { %327 = vmatpush.msra.mxu2 %v1240_v19 }
  0x33   :  { %328 = vmatpush.msra.mxu2 %v1250_v23 }
  0x35   :  { %329 = vmatpush.msra.mxu2 %v1256_v24 }
  0x37   :  { %859 = vmatmul.msk.f32.gmra.mxu1 %vm211_vm0, %v194_v48 }
  0x7f   :  { %v200_v56 = vpop.permute.xlu0 %199  ;;  %v204_v12 = vpop.permute.xlu1 %203 }
  0x80   :  { %v212_v58 = vsel %vm211_vm0, %v170_v54, %v200_v56  ;;  %v214_v17 = vsel %vm211_vm0, %v172_v14, %v204_v12 }
  0x81   :  { %268 = vmatmul.f32.vlgmr.msra.gmra.mxu0 %v212_v58 }
  0x87   :  { %v202_v5 = vpop.permute.xlu0 %201  ;;  %v206_v20 = vpop.permute.xlu1 %205 }
  0x88   :  { %v213_v7 = vsel %vm211_vm0, %v160_v3, %v202_v5  ;;  %v215_v22 = vsel %vm211_vm0, %v158_v21, %v206_v20  ;;  %v1001_v3 = vmov 512.0   ;;  %v1286_v5 = vld [vmem:[%s1459_s8] sm:$0xff] }
  0x89   :  { %271 = vmatmul.f32.gmra.mxu0 %v213_v7  ;;  %912 = vrcp.f32 %v1001_v3  ;;  %427 = vmatpush.msra.mxu3 %v1286_v5  ;;  %v524_v3 = vld [vmem:[#allocation5 + $0xf8] sm:$0xff] }
  0x8a   :  { %570 = vmatpush.msrb.mxu1 %v524_v3  ;;  %v502_v3 = vld [vmem:[#allocation5 + $0x48] sm:$0xff] }
  0x8b   :  { %450 = vmatpush.msrb.mxu3 %v1286_v5 }
  0x8f   :  { %v913_v11 = vpop.eup %912 }
  0x90   :  { %vm374_vm8 = vweird.f32 %v913_v11 }
  0x91   :  { %274 = vmatmul.f32.gmra.mxu0 %v214_v17  ;;  %v370_v17 = vmul.f32 512.0, %v913_v11 }
  0x99   :  { %277 = vmatmul.f32.gmra.mxu0 %v215_v22 }
  0x9c   :  { %v298_v25 = vpop.f32.mrf.mxu1 }
  0xa4   :  { %v301_v29 = vpop.f32.mrf.mxu1 }
  0xac   :  { %v304_v32 = vpop.f32.mrf.mxu1 }
  0xb4   :  { %v307_v35 = vpop.f32.mrf.mxu1 }
  0xfe   :  { %v269_v26 = vpop.f32.mrf.mxu0 }
  0xff   :  { %v1259_v28 = vadd.f32 %v298_v25, %v269_v26  ;;  %v371_v26 = vsub.f32 1.0, %v370_v17  ;;  %v537_v17 = vld [vmem:[#allocation5 + $0x160] sm:$0xff] }
 0x101   :  { %330 = vmatmul.f32.vlgmr.msra.gmra.mxu2 %v1259_v28  ;;  %v310_v39 = vmul.f32 %v1259_v28, %v1259_v28 }
 0x106   :  { %v272_v30 = vpop.f32.mrf.mxu0 }
 0x107   :  { %v1262_v31 = vadd.f32 %v301_v29, %v272_v30 }
 0x109   :  { %333 = vmatmul.f32.gmra.mxu2 %v1262_v31  ;;  %v311_v40 = vmul.f32 %v1262_v31, %v1262_v31 }
 0x10e   :  { %v275_v33 = vpop.f32.mrf.mxu0 }
 0x10f   :  { %v1265_v34 = vadd.f32 %v304_v32, %v275_v33 }
 0x111   :  { %336 = vmatmul.f32.gmra.mxu2 %v1265_v34  ;;  %v312_v41 = vmul.f32 %v1265_v34, %v1265_v34 }
 0x116   :  { %v278_v37 = vpop.f32.mrf.mxu0 }
 0x117   :  { %v1268_v38 = vadd.f32 %v307_v35, %v278_v37  ;;  %v372_v35 = vmul.f32 %v913_v11, %v371_v26  ;;  %v519_v26 = vld [vmem:[#allocation5 + $0xd0] sm:$0xff] }
 0x119   :  { %339 = vmatmul.f32.gmra.mxu2 %v1268_v38  ;;  %v313_v42 = vmul.f32 %v1268_v38, %v1268_v38 }
 0x121   :  { %342 = vmatmul.f32.gmra.mxu2 %v310_v39 }
 0x129   :  { %345 = vmatmul.f32.gmra.mxu2 %v311_v40 }
 0x131   :  { %348 = vmatmul.f32.gmra.mxu2 %v312_v41 }
 0x139   :  { %351 = vmatmul.f32.gmra.mxu2 %v313_v42  ;;  %v373_v42 = vadd.f32 %v913_v11, %v372_v35 }
 0x184   :  { %v331_v43 = vpop.f32.mrf.mxu2 }
 0x185   :  { %v356_v54 = vsel %vm355_vm7, %v331_v43, 0.0 }
 0x18c   :  { %v334_v44 = vpop.f32.mrf.mxu2 }
 0x18d   :  { %v357_v52 = vsel %vm355_vm7, %v334_v44, 0.0 }
 0x18e   :  { %v358_v58 = vadd.f32 %v357_v52, %v356_v54 }
 0x194   :  { %v337_v45 = vpop.f32.mrf.mxu2 }
 0x195   :  { %v359_v56 = vsel %vm355_vm7, %v337_v45, 0.0 }
 0x196   :  { %v360_v60 = vadd.f32 %v359_v56, %v358_v58 }
 0x19c   :  { %v340_v47 = vpop.f32.mrf.mxu2 }
 0x19d   :  { %v361_v59 = vsel %vm355_vm7, %v340_v47, 0.0  ;;  %v1294_v47 = vsel %vm374_vm8, %v913_v11, %v373_v42  ;;  %v522_v11 = vld [vmem:[#allocation5 + $0xe8] sm:$0xff] }
 0x19e   :  { %v362_v63 = vadd.f32 %v361_v59, %v360_v60 }
 0x1a0   :  { %v363_v7 = vrot.slane %v362_v63, 4 }
 0x1a2   :  { %v364_v12 = vadd.f32 %v363_v7, %v362_v63  ;;  %v540_v63 = vld [vmem:[#allocation5 + $0x178] sm:$0xff]  ;;  %v523_v7 = vld [vmem:[#allocation5 + $0xf0] sm:$0xff] }
 0x1a3   :  { %872 = vmatpush.msrb.mxu2 %v540_v63  ;;  %599 = vmatpush.msrb.mxu0 %v540_v63  ;;  %v504_v63 = vld [vmem:[#allocation5 + $0x58] sm:$0xff] }
 0x1a4   :  { %v343_v48 = vpop.f32.mrf.mxu2  ;;  %v365_v21 = vrot.slane %v364_v12, 2  ;;  %571 = vmatpush.msrb.mxu1 %v523_v7  ;;  %v516_v7 = vld [vmem:[#allocation5 + $0xb8] sm:$0xff] }
 0x1a5   :  { %v377_v22 = vsel %vm355_vm7, %v343_v48, 0.0 }
 0x1a6   :  { %v366_v30 = vadd.f32 %v365_v21, %v364_v12  ;;  %572 = vmatpush.msrb.mxu1 %v522_v11  ;;  %v536_v21 = vld [vmem:[#allocation5 + $0x158] sm:$0xff] }
 0x1a7   :  { %v500_v11 = vld [vmem:[#allocation5 + $0x38] sm:$0xff] }
 0x1a8   :  { %v367_v40 = vrot.slane %v366_v30, 1 }
 0x1aa   :  { %v368_v44 = vadd.f32 %v367_v40, %v366_v30  ;;  %v534_v30 = vld [vmem:[#allocation5 + $0x148] sm:$0xff] }
 0x1ac   :  { %v346_v2 = vpop.f32.mrf.mxu2  ;;  %v376_v54 = vmul.f32 %v1294_v47, %v368_v44 }
 0x1ad   :  { %v378_v20 = vsel %vm355_vm7, %v346_v2, 0.0  ;;  %v539_v2 = vld [vmem:[#allocation5 + $0x170] sm:$0xff] }
 0x1ae   :  { %v379_v29 = vadd.f32 %v378_v20, %v377_v22  ;;  %v391_v59 = vmul.f32 %v376_v54, %v376_v54  ;;  %873 = vmatpush.msrb.mxu2 %v539_v2  ;;  %600 = vmatpush.msrb.mxu0 %v539_v2  ;;  %v521_v20 = vld [vmem:[#allocation5 + $0xe0] sm:$0xff]  ;;  %v520_v22 = vld [vmem:[#allocation5 + $0xd8] sm:$0xff]  ;;  %v503_v2 = vld [vmem:[#allocation5 + $0x50] sm:$0xff] }
 0x1af   :  { %573 = vmatpush.msrb.mxu1 %v521_v20  ;;  %v514_v20 = vld [vmem:[#allocation5 + $0xa8] sm:$0xff] }
 0x1b1   :  { %574 = vmatpush.msrb.mxu1 %v520_v22  ;;  %v531_v22 = vld [vmem:[#allocation5 + $0x130] sm:$0xff] }
 0x1b3   :  { %575 = vmatpush.msrb.mxu1 %v519_v26  ;;  %v498_v26 = vld [vmem:[#allocation5 + $0x28] sm:$0xff] }
 0x1b4   :  { %v349_v14 = vpop.f32.mrf.mxu2 }
 0x1b5   :  { %v380_v25 = vsel %vm355_vm7, %v349_v14, 0.0  ;;  %v538_v14 = vld [vmem:[#allocation5 + $0x168] sm:$0xff] }
 0x1b6   :  { %v381_v32 = vadd.f32 %v380_v25, %v379_v29  ;;  %874 = vmatpush.msrb.mxu2 %v538_v14  ;;  %601 = vmatpush.msrb.mxu0 %v538_v14  ;;  %v535_v25 = vld [vmem:[#allocation5 + $0x150] sm:$0xff] }
 0x1b7   :  { %v515_v14 = vld [vmem:[#allocation5 + $0xb0] sm:$0xff] }
 0x1b8   :  { %875 = vmatpush.msrb.mxu2 %v537_v17  ;;  %602 = vmatpush.msrb.mxu0 %v537_v17  ;;  %v532_v17 = vld [vmem:[#allocation5 + $0x138] sm:$0xff] }
 0x1ba   :  { %876 = vmatpush.msrb.mxu2 %v536_v21  ;;  %603 = vmatpush.msrb.mxu0 %v536_v21  ;;  %v499_v21 = vld [vmem:[#allocation5 + $0x30] sm:$0xff] }
 0x1bc   :  { %v352_v33 = vpop.f32.mrf.mxu2  ;;  %877 = vmatpush.msrb.mxu2 %v535_v25  ;;  %604 = vmatpush.msrb.mxu0 %v535_v25  ;;  %v513_v25 = vld [vmem:[#allocation5 + $0xa0] sm:$0xff] }
 0x1bd   :  { %v382_v37 = vsel %vm355_vm7, %v352_v33, 0.0  ;;  %v518_v33 = vld [vmem:[#allocation5 + $0xc8] sm:$0xff] }
 0x1be   :  { %v383_v39 = vadd.f32 %v382_v37, %v381_v32  ;;  %878 = vmatpush.msrb.mxu2 %v534_v30  ;;  %v517_v37 = vld [vmem:[#allocation5 + $0xc0] sm:$0xff]  ;;  %605 = vmatpush.msrb.mxu0 %v534_v30  ;;  %v512_v30 = vld [vmem:[#allocation5 + $0x98] sm:$0xff] }
 0x1bf   :  { %576 = vmatpush.msrb.mxu1 %v518_v33  ;;  %v529_v33 = vld [vmem:[#allocation5 + $0x120] sm:$0xff] }
 0x1c0   :  { %v384_v41 = vrot.slane %v383_v39, 4 }
 0x1c1   :  { %577 = vmatpush.msrb.mxu1 %v517_v37  ;;  %v496_v37 = vld [vmem:[#allocation5 + $0x18] sm:$0xff] }
 0x1c2   :  { %v385_v43 = vadd.f32 %v384_v41, %v383_v39  ;;  %v393_v41 = vld [vmem:[%s1453_s2] sm:$0x1] }
 0x1c3   :  { %578 = vmatpush.msrb.mxu1 %v516_v7 }
 0x1c4   :  { %v386_v45 = vrot.slane %v385_v43, 2 }
 0x1c5   :  { %579 = vmatpush.msrb.mxu1 %v515_v14 }
 0x1c6   :  { %v387_v48 = vadd.f32 %v386_v45, %v385_v43  ;;  %v508_v45 = vld [vmem:[#allocation5 + $0x78] sm:$0xff] }
 0x1c7   :  { %580 = vmatpush.msrb.mxu1 %v514_v20 }
 0x1c8   :  { %v388_v52 = vrot.slane %v387_v48, 1 }
 0x1c9   :  { %581 = vmatpush.msrb.mxu1 %v513_v25 }
 0x1ca   :  { %v389_v56 = vadd.f32 %v388_v52, %v387_v48  ;;  %v507_v48 = vld [vmem:[#allocation5 + $0x70] sm:$0xff] }
 0x1cb   :  { %582 = vmatpush.msrb.mxu1 %v512_v30 }
 0x1cc   :  { %v390_v58 = vmul.f32 %v389_v56, %v1294_v47  ;;  %v506_v56 = vld [vmem:[#allocation5 + $0x68] sm:$0xff] }
 0x1ce   :  { %v392_v60 = vsub.f32 %v390_v58, %v391_v59  ;;  %v406_v58 = vld [vmem:[%s1454_s3] sm:$0x1] }
 0x1cf   :  { %v505_v59 = vld [vmem:[#allocation5 + $0x60] sm:$0xff] }
 0x1d0   :  { %v394_v12 = vadd.f32 1e-05, %v392_v60 }
 0x1d2   :  { %914 = vrsqrt.f32 %v394_v12  ;;  %vm401_vm10 = vweird.f32 %v394_v12 }
 0x1d8   :  { %v915_v29 = vpop.eup %914 }
 0x1d9   :  { %v396_v32 = vmul.f32 %v915_v29, %v394_v12  ;;  %vm402_vm9 = vweird.f32 %v915_v29  ;;  %v501_v12 = vld [vmem:[#allocation5 + $0x40] sm:$0xff] }
 0x1da   :  { %vm403_vm11 = vmor %vm401_vm10, %vm402_vm9 }
 0x1db   :  { %v397_v35 = vmul.f32 %v915_v29, %v396_v32  ;;  %v497_v32 = vld [vmem:[#allocation5 + $0x20] sm:$0xff] }
 0x1dd   :  { %v398_v39 = vmul.f32 0.5, %v397_v35  ;;  %v511_v35 = vld [vmem:[#allocation5 + $0x90] sm:$0xff] }
 0x1de   :  { %583 = vmatpush.msrb.mxu1 %v511_v35 }
 0x1df   :  { %v399_v40 = vsub.f32 1.5, %v398_v39  ;;  %v528_v39 = vld [vmem:[#allocation5 + $0x118] sm:$0xff] }
 0x1e1   :  { %v400_v42 = vmul.f32 %v915_v29, %v399_v40  ;;  %v510_v40 = vld [vmem:[#allocation5 + $0x88] sm:$0xff] }
 0x1e2   :  { %584 = vmatpush.msrb.mxu1 %v510_v40 }
 0x1e3   :  { %v404_v43 = vsel %vm403_vm11, %v915_v29, %v400_v42  ;;  %v530_v29 = vld [vmem:[#allocation5 + $0x128] sm:$0xff]  ;;  %v527_v42 = vld [vmem:[#allocation5 + $0x110] sm:$0xff] }
 0x1e4   :  { %v405_v44 = vmul.f32 %v404_v43, %v393_v41  ;;  %v495_v41 = vld [vmem:[#allocation5 + $0x10] sm:$0xff]  ;;  %v509_v43 = vld [vmem:[#allocation5 + $0x80] sm:$0xff] }
 0x1e5   :  { %585 = vmatpush.msrb.mxu1 %v509_v43 }
 0x1e6   :  { %860 = vmatmul.msk.f32.vlgmr.msra.gmra.mxu3 %vm355_vm7, %v405_v44  ;;  %v407_v52 = vmul.f32 %v405_v44, %v376_v54  ;;  %v533_v54 = vld [vmem:[#allocation5 + $0x140] sm:$0xff]  ;;  %v494_v44 = vld [vmem:[#allocation5 + $0x8] sm:$0xff] }
 0x1e7   :  { %541 = vmatpush.msra.mxu3 %v508_v45  ;;  %879 = vmatpush.msrb.mxu2 %v533_v54  ;;  %v526_v45 = vld [vmem:[#allocation5 + $0x108] sm:$0xff] }
 0x1e8   :  { %v408_v60 = vsub.f32 %v406_v58, %v407_v52  ;;  %606 = vmatpush.msrb.mxu0 %v533_v54  ;;  %v525_v52 = vld [vmem:[#allocation5 + $0x100] sm:$0xff]  ;;  %632 = vmatpush.msra.mxu1 %v1139_v49 }
 0x1e9   :  { %542 = vmatpush.msra.mxu3 %v507_v48  ;;  %880 = vmatpush.msrb.mxu2 %v532_v17  ;;  %v493_v48 = vld [vmem:[#allocation5] sm:$0xff] }
 0x1ea   :  { %607 = vmatpush.msrb.mxu0 %v532_v17  ;;  %633 = vmatpush.msra.mxu1 %v1144_v50 }
 0x1eb   :  { %543 = vmatpush.msra.mxu3 %v506_v56  ;;  %881 = vmatpush.msrb.mxu2 %v531_v22 }
 0x1ec   :  { %608 = vmatpush.msrb.mxu0 %v531_v22  ;;  %634 = vmatpush.msra.mxu1 %v1156_v53 }
 0x1ed   :  { %544 = vmatpush.msra.mxu3 %v505_v59  ;;  %882 = vmatpush.msrb.mxu2 %v530_v29 }
 0x1ee   :  { %861 = vmatmul.msk.f32.vlgmr.msrb.gmra.mxu3 %vm355_vm7, %v408_v60  ;;  %609 = vmatpush.msrb.mxu0 %v530_v29 }
 0x1ef   :  { %545 = vmatpush.msra.mxu3 %v504_v63  ;;  %883 = vmatpush.msrb.mxu2 %v529_v33 }
 0x1f0   :  { %610 = vmatpush.msrb.mxu0 %v529_v33  ;;  %635 = vmatpush.msra.mxu1 %v1164_v55 }
 0x1f1   :  { %546 = vmatpush.msra.mxu3 %v503_v2  ;;  %884 = vmatpush.msrb.mxu2 %v528_v39 }
 0x1f2   :  { %611 = vmatpush.msrb.mxu0 %v528_v39  ;;  %636 = vmatpush.msra.mxu1 %v1170_v57 }
 0x1f3   :  { %547 = vmatpush.msra.mxu3 %v502_v3  ;;  %885 = vmatpush.msrb.mxu2 %v527_v42 }
 0x1f4   :  { %612 = vmatpush.msrb.mxu0 %v527_v42  ;;  %637 = vmatpush.msra.mxu1 %v1179_v61 }
 0x1f5   :  { %548 = vmatpush.msra.mxu3 %v501_v12  ;;  %886 = vmatpush.msrb.mxu2 %v526_v45 }
 0x1f6   :  { %613 = vmatpush.msrb.mxu0 %v526_v45  ;;  %638 = vmatpush.msra.mxu1 %v1185_v62 }
 0x1f7   :  { %549 = vmatpush.msra.mxu3 %v500_v11  ;;  %887 = vmatpush.msrb.mxu2 %v525_v52 }
 0x1f8   :  { %614 = vmatpush.msrb.mxu0 %v525_v52  ;;  %639 = vmatpush.msra.mxu1 %v1194_v4 }
 0x1f9   :  { %550 = vmatpush.msra.mxu3 %v499_v21 }
 0x1fa   :  { %640 = vmatpush.msra.mxu1 %v1200_v6 }
 0x1fb   :  { %551 = vmatpush.msra.mxu3 %v498_v26 }
 0x1fc   :  { %641 = vmatpush.msra.mxu1 %v1213_v13 }
 0x1fd   :  { %552 = vmatpush.msra.mxu3 %v497_v32 }
 0x1fe   :  { %642 = vmatpush.msra.mxu1 %v1221_v15 }
 0x1ff   :  { %553 = vmatpush.msra.mxu3 %v496_v37 }
 0x200   :  { %643 = vmatpush.msra.mxu1 %v1227_v16 }
 0x201   :  { %554 = vmatpush.msra.mxu3 %v495_v41 }
 0x202   :  { %644 = vmatpush.msra.mxu1 %v1234_v18 }
 0x203   :  { %555 = vmatpush.msra.mxu3 %v494_v44 }
 0x204   :  { %645 = vmatpush.msra.mxu1 %v1240_v19 }
 0x205   :  { %556 = vmatpush.msra.mxu3 %v493_v48 }
 0x206   :  { %646 = vmatpush.msra.mxu1 %v1250_v23 }
 0x207   :  { %888 = vmatpush.msrb.mxu3 %v1139_v49 }
 0x208   :  { %647 = vmatpush.msra.mxu1 %v1256_v24 }
 0x209   :  { %889 = vmatpush.msrb.mxu3 %v1144_v50 }
 0x20b   :  { %890 = vmatpush.msrb.mxu3 %v1156_v53 }
 0x20d   :  { %891 = vmatpush.msrb.mxu3 %v1164_v55 }
 0x20f   :  { %892 = vmatpush.msrb.mxu3 %v1170_v57 }
 0x211   :  { %893 = vmatpush.msrb.mxu3 %v1179_v61 }
 0x213   :  { %894 = vmatpush.msrb.mxu3 %v1185_v62 }
 0x215   :  { %895 = vmatpush.msrb.mxu3 %v1194_v4 }
 0x217   :  { %896 = vmatpush.msrb.mxu3 %v1200_v6 }
 0x219   :  { %897 = vmatpush.msrb.mxu3 %v1213_v13 }
 0x21b   :  { %898 = vmatpush.msrb.mxu3 %v1221_v15 }
 0x21d   :  { %899 = vmatpush.msrb.mxu3 %v1227_v16 }
 0x21f   :  { %900 = vmatpush.msrb.mxu3 %v1234_v18 }
 0x221   :  { %901 = vmatpush.msrb.mxu3 %v1240_v19 }
 0x223   :  { %902 = vmatpush.msrb.mxu3 %v1250_v23 }
 0x225   :  { %903 = vmatpush.msrb.mxu3 %v1256_v24 }
 0x269   :  { %v429_v49 = vpop.f32.mrf.mxu3 }
 0x26a   :  { %v455_v50 = vperm.slane %v429_v49, 0 }
 0x26c   :  { %v457_v53 = vmul.f32 %v455_v50, %v1262_v31  ;;  %v458_v57 = vmul.f32 %v455_v50, %v1265_v34  ;;  %v459_v61 = vmul.f32 %v455_v50, %v1268_v38  ;;  %v456_v4 = vmul.f32 %v455_v50, %v1259_v28 }
 0x271   :  { %v452_v55 = vpop.f32.mrf.mxu3 }
 0x272   :  { %v460_v62 = vperm.slane %v452_v55, 0 }
 0x274   :  { %v462_v6 = vadd.f32 %v460_v62, %v457_v53  ;;  %v463_v13 = vadd.f32 %v460_v62, %v458_v57  ;;  %v464_v56 = vadd.f32 %v460_v62, %v459_v61  ;;  %v461_v15 = vadd.f32 %v460_v62, %v456_v4 }
 0x276   :  { %v466_v31 = vmax.f32 %v462_v6, 0.0  ;;  %v467_v58 = vmax.f32 %v463_v13, 0.0  ;;  %v468_v34 = vmax.f32 %v464_v56, 0.0  ;;  %v465_v59 = vmax.f32 %v461_v15, 0.0  ;;  %v782_v6 = vld [vmem:[%s1460_s9 + $0x38] sm:$0xff]  ;;  %v781_v15 = vld [vmem:[%s1460_s9 + $0x30] sm:$0xff] }
 0x277   :  { %803 = vmatpush.msra.mxu0 %v782_v6 }
 0x278   :  { %v469_v28 = vrot.slane %v465_v59, 7  ;;  %586 = vmatmul.f32.vlgmr.msrb.gmra.mxu1 %v465_v59  ;;  %v472_v16 = vrot.slane %v468_v34, 7  ;;  %v481_v38 = vrot.slane %v465_v59, 1  ;;  %v482_v60 = vrot.slane %v466_v31, 1  ;;  %v778_v59 = vld [vmem:[%s1460_s9 + $0x18] sm:$0xff] }
 0x279   :  { %v483_v63 = vrot.slane %v467_v58, 1  ;;  %v484_v2 = vrot.slane %v468_v34, 1  ;;  %737 = vmatpush.msrb.mxu1 %v1286_v5  ;;  %v470_v23 = vrot.slane %v466_v31, 7  ;;  %v471_v24 = vrot.slane %v467_v58, 7  ;;  %804 = vmatpush.msra.mxu0 %v781_v15 }
 0x27a   :  { %v476_v18 = vsel %vm157_vm3, %v472_v16, %v469_v28  ;;  %v487_v3 = vsel %vm178_vm1, %v481_v38, %v482_v60 }
 0x27b   :  { %862 = vmatmul.msk.f32.vlgmr.msra.gmra.mxu3 %vm1146_vm5, %v476_v18  ;;  %615 = vmatmul.f32.vlgmr.msrb.gmra.mxu0 %v487_v3  ;;  %v485_v19 = vsel %vm178_vm1, %v483_v63, %v484_v2  ;;  %v475_v7 = vsel %vm157_vm3, %v469_v28, %v470_v23  ;;  %v486_v54 = vsel %vm178_vm1, %v482_v60, %v483_v63  ;;  %v776_v60 = vld [vmem:[%s1460_s9 + $0x8] sm:$0xff]  ;;  %v775_v18 = vld [vmem:[%s1460_s9] sm:$0xff] }
 0x27c   :  { %621 = vmatmul.f32.vlgmr.msrb.gmra.mxu2 %v485_v19  ;;  %v488_v51 = vsel %vm178_vm1, %v484_v2, %v481_v38  ;;  %v474_v12 = vsel %vm157_vm3, %v470_v23, %v471_v24  ;;  %v473_v14 = vsel %vm157_vm3, %v471_v24, %v472_v16  ;;  %v777_v38 = vld [vmem:[%s1460_s9 + $0x10] sm:$0xff] }
 0x280   :  { %589 = vmatmul.f32.gmra.mxu1 %v466_v31  ;;  %v780_v31 = vld [vmem:[%s1460_s9 + $0x28] sm:$0xff] }
 0x281   :  { %805 = vmatpush.msra.mxu0 %v780_v31 }
 0x283   :  { %560 = vmatmul.f32.gmra.mxu3 %v475_v7  ;;  %864 = vmatmul.msk.f32.gmra.mxu0 %vm1109_vm2, %v486_v54 }
 0x284   :  { %865 = vmatmul.msk.f32.gmra.mxu2 %vm1127_vm4, %v488_v51 }
 0x288   :  { %592 = vmatmul.f32.gmra.mxu1 %v467_v58 }
 0x28b   :  { %863 = vmatmul.msk.f32.gmra.mxu3 %vm1203_vm6, %v474_v12 }
 0x290   :  { %595 = vmatmul.f32.gmra.mxu1 %v468_v34  ;;  %v779_v34 = vld [vmem:[%s1460_s9 + $0x20] sm:$0xff] }
 0x291   :  { %806 = vmatpush.msra.mxu0 %v779_v34 }
 0x293   :  { %566 = vmatmul.f32.gmra.mxu3 %v473_v14  ;;  %807 = vmatpush.msra.mxu0 %v778_v59 }
 0x295   :  { %808 = vmatpush.msra.mxu0 %v777_v38 }
 0x297   :  { %809 = vmatpush.msra.mxu0 %v776_v60 }
 0x299   :  { %810 = vmatpush.msra.mxu0 %v775_v18 }
 0x29a   :  { %868 = vmatmul.msk.f32.vlgmr.msra.gmra.mxu0 %vm211_vm0, %v1078_v0 }
 0x2a2   :  { %869 = vmatmul.msk.f32.gmra.mxu0 %vm211_vm0, %v1090_v8 }
 0x2aa   :  { %870 = vmatmul.msk.f32.gmra.mxu0 %vm211_vm0, %v1083_v1 }
 0x2b2   :  { %871 = vmatmul.msk.f32.gmra.mxu0 %vm211_vm0, %v1095_v9  ;;  %v716_v9 = vld [vmem:[%s1457_s6] sm:$0x1]  ;;  %s1002_s6 = smov [#allocation7]  }
 0x2f5   :  { %v587_v36 = vpop.f32.mrf.mxu1 }
 0x2f8   :  { %v616_v11 = vpop.f32.mrf.mxu0 }
 0x2fd   :  { %v590_v46 = vpop.f32.mrf.mxu1 }
 0x2fe   :  { %v558_v17 = vpop.f32.mrf.mxu3 }
 0x2ff   :  { %v588_v20 = vadd.f32 %v587_v36, %v558_v17  ;;  %v622_v29 = vpop.f32.mrf.mxu2 }
 0x300   :  { %v619_v10 = vpop.f32.mrf.mxu0 }
 0x301   :  { %v1367_v21 = vadd.f32 %v616_v11, %v588_v20 }
 0x303   :  { %648 = vmatmul.f32.vlgmr.msra.gmra.mxu1 %v1367_v21  ;;  %v628_v41 = vmul.f32 %v1367_v21, %v1367_v21 }
 0x304   :  { %760 = vmatpush.msra.mxu1 %v1286_v5 }
 0x305   :  { %v593_v27 = vpop.f32.mrf.mxu1 }
 0x306   :  { %v561_v22 = vpop.f32.mrf.mxu3 }
 0x307   :  { %v591_v25 = vadd.f32 %v590_v46, %v561_v22  ;;  %v625_v40 = vpop.f32.mrf.mxu2 }
 0x309   :  { %v1371_v26 = vadd.f32 %v619_v10, %v591_v25 }
 0x30b   :  { %651 = vmatmul.f32.gmra.mxu1 %v1371_v26  ;;  %v629_v42 = vmul.f32 %v1371_v26, %v1371_v26 }
 0x30d   :  { %v596_v35 = vpop.f32.mrf.mxu1 }
 0x30e   :  { %v564_v30 = vpop.f32.mrf.mxu3 }
 0x30f   :  { %v594_v32 = vadd.f32 %v593_v27, %v564_v30 }
 0x311   :  { %v1374_v33 = vadd.f32 %v622_v29, %v594_v32 }
 0x313   :  { %654 = vmatmul.f32.gmra.mxu1 %v1374_v33  ;;  %v630_v43 = vmul.f32 %v1374_v33, %v1374_v33 }
 0x316   :  { %v567_v37 = vpop.f32.mrf.mxu3 }
 0x317   :  { %v597_v39 = vadd.f32 %v596_v35, %v567_v37 }
 0x319   :  { %v1377_v5 = vadd.f32 %v625_v40, %v597_v39  ;;  %v703_v40 = vld [vmem:[%s1456_s5] sm:$0x1] }
 0x31b   :  { %657 = vmatmul.f32.vlgmr.msrb.gmra.mxu3 %v1377_v5  ;;  %v631_v44 = vmul.f32 %v1377_v5, %v1377_v5 }
 0x323   :  { %660 = vmatmul.f32.gmra.mxu3 %v628_v41 }
 0x32b   :  { %663 = vmatmul.f32.gmra.mxu3 %v629_v42 }
 0x333   :  { %666 = vmatmul.f32.gmra.mxu3 %v630_v43 }
 0x33b   :  { %669 = vmatmul.f32.gmra.mxu3 %v631_v44  ;;  %v812_v44 = vpop.f32.mrf.mxu0 }
 0x380   :  { %v649_v45 = vpop.f32.mrf.mxu1 }
 0x381   :  { %v673_v55 = vsel %vm355_vm7, %v649_v45, 0.0  ;;  %v815_v45 = vpop.f32.mrf.mxu0 }
 0x388   :  { %v652_v48 = vpop.f32.mrf.mxu1 }
 0x389   :  { %v674_v53 = vsel %vm355_vm7, %v652_v48, 0.0  ;;  %v818_v48 = vpop.f32.mrf.mxu0 }
 0x38a   :  { %v675_v61 = vadd.f32 %v674_v53, %v673_v55  ;;  %v911_v53 = vld [vmem:[%s1461_s10] ss:$0 sm:$0xff]  ;;  %s840_s10 = sshll.u32 %s1002_s6, 4  ;;  %s841_s10 = int_to_ptr.vmem [resolvable:$true] %s840_s10 }
 0x38b   :  { %v816_v15 = vadd.f32 %v911_v53, %v815_v45  ;;  %v819_v31 = vadd.f32 %v911_v53, %v818_v48 }
 0x390   :  { %v655_v49 = vpop.f32.mrf.mxu1 }
 0x391   :  { %v676_v57 = vsel %vm355_vm7, %v655_v49, 0.0 }
 0x392   :  { %v677_v4 = vadd.f32 %v676_v57, %v675_v61 }
 0x39e   :  { %v658_v52 = vpop.f32.mrf.mxu3 }
 0x39f   :  { %v678_v62 = vsel %vm355_vm7, %v658_v52, 0.0 }
 0x3a0   :  { %v679_v13 = vadd.f32 %v678_v62, %v677_v4 }
 0x3a2   :  { %v680_v58 = vrot.slane %v679_v13, 4 }
 0x3a4   :  { %v681_v28 = vadd.f32 %v680_v58, %v679_v13 }
 0x3a6   :  { %v661_v50 = vpop.f32.mrf.mxu3  ;;  %v682_v2 = vrot.slane %v681_v28, 2 }
 0x3a7   :  { %v687_v3 = vsel %vm355_vm7, %v661_v50, 0.0  ;;  %v821_v50 = vpop.f32.mrf.mxu0 }
 0x3a8   :  { %v683_v7 = vadd.f32 %v682_v2, %v681_v28  ;;  %v822_v61 = vadd.f32 %v911_v53, %v821_v50 }
 0x3aa   :  { %v684_v14 = vrot.slane %v683_v7, 1 }
 0x3ac   :  { %v685_v17 = vadd.f32 %v684_v14, %v683_v7 }
 0x3ae   :  { %v664_v56 = vpop.f32.mrf.mxu3  ;;  %v686_v22 = vmul.f32 %v685_v17, %v1294_v47 }
 0x3af   :  { %v688_v63 = vsel %vm355_vm7, %v664_v56, 0.0  ;;  %v813_v56 = vadd.f32 %v911_v53, %v812_v44 }
 0x3b0   :  { %v689_v23 = vadd.f32 %v688_v63, %v687_v3  ;;  %v701_v0 = vmul.f32 %v686_v22, %v686_v22 }
 0x3b6   :  { %v667_v16 = vpop.f32.mrf.mxu3 }
 0x3b7   :  { %v690_v19 = vsel %vm355_vm7, %v667_v16, 0.0 }
 0x3b8   :  { %v691_v54 = vadd.f32 %v690_v19, %v689_v23 }
 0x3be   :  { %v670_v51 = vpop.f32.mrf.mxu3 }
 0x3bf   :  { %v692_v24 = vsel %vm355_vm7, %v670_v51, 0.0 }
 0x3c0   :  { %v693_v12 = vadd.f32 %v692_v24, %v691_v54 }
 0x3c2   :  { %v694_v36 = vrot.slane %v693_v12, 4 }
 0x3c4   :  { %v695_v11 = vadd.f32 %v694_v36, %v693_v12 }
 0x3c6   :  { %v696_v20 = vrot.slane %v695_v11, 2 }
 0x3c8   :  { %v697_v46 = vadd.f32 %v696_v20, %v695_v11 }
 0x3ca   :  { %v698_v25 = vrot.slane %v697_v46, 1 }
 0x3cc   :  { %v699_v10 = vadd.f32 %v698_v25, %v697_v46 }
 0x3ce   :  { %v700_v27 = vmul.f32 %v699_v10, %v1294_v47 }
 0x3d0   :  { %v702_v29 = vsub.f32 %v700_v27, %v701_v0 }
 0x3d2   :  { %v704_v30 = vadd.f32 1e-05, %v702_v29 }
 0x3d4   :  { %916 = vrsqrt.f32 %v704_v30  ;;  %vm711_vm13 = vweird.f32 %v704_v30 }
 0x3da   :  { %v917_v8 = vpop.eup %916 }
 0x3db   :  { %v706_v32 = vmul.f32 %v917_v8, %v704_v30  ;;  %vm712_vm12 = vweird.f32 %v917_v8 }
 0x3dc   :  { %vm713_vm14 = vmor %vm711_vm13, %vm712_vm12 }
 0x3dd   :  { %v707_v35 = vmul.f32 %v917_v8, %v706_v32 }
 0x3df   :  { %v708_v37 = vmul.f32 0.5, %v707_v35 }
 0x3e1   :  { %v709_v39 = vsub.f32 1.5, %v708_v37 }
 0x3e3   :  { %v710_v1 = vmul.f32 %v917_v8, %v709_v39 }
 0x3e5   :  { %v714_v47 = vsel %vm713_vm14, %v917_v8, %v710_v1 }
 0x3e6   :  { %v715_v41 = vmul.f32 %v714_v47, %v703_v40 }
 0x3e8   :  { %866 = vmatmul.msk.f32.vlgmr.msrb.gmra.mxu1 %vm355_vm7, %v715_v41  ;;  %v717_v42 = vmul.f32 %v715_v41, %v686_v22 }
 0x3ea   :  { %v718_v43 = vsub.f32 %v716_v9, %v717_v42 }
 0x3f0   :  { %867 = vmatmul.msk.f32.vlgmr.msra.gmra.mxu1 %vm355_vm7, %v718_v43 }
 0x465   :  { %v739_v52 = vpop.f32.mrf.mxu1 }
 0x466   :  { %v765_v49 = vperm.slane %v739_v52, 0 }
 0x468   :  { %v766_v55 = vmul.f32 %v765_v49, %v1367_v21  ;;  %v767_v62 = vmul.f32 %v765_v49, %v1371_v26  ;;  %v768_v4 = vmul.f32 %v765_v49, %v1374_v33  ;;  %v769_v13 = vmul.f32 %v765_v49, %v1377_v5 }
 0x46d   :  { %v762_v57 = vpop.f32.mrf.mxu1 }
 0x46e   :  { %v770_v6 = vperm.slane %v762_v57, 0 }
 0x470   :  { %v771_v58 = vadd.f32 %v770_v6, %v766_v55  ;;  %v772_v34 = vadd.f32 %v770_v6, %v767_v62  ;;  %v773_v59 = vadd.f32 %v770_v6, %v768_v4  ;;  %v774_v28 = vadd.f32 %v770_v6, %v769_v13 }
 0x472   :  { %v824_v16 = vadd.f32 %v813_v56, %v771_v58  ;;  %v825_v38 = vadd.f32 %v816_v15, %v772_v34  ;;  %v826_v60 = vadd.f32 %v819_v31, %v773_v59  ;;  %v827_v21 = vadd.f32 %v822_v61, %v774_v28 }
 0x474   :  { %v828_v63 = vmax.f32 %v824_v16, 0.0  ;;  %v829_v2 = vmax.f32 %v825_v38, 0.0  ;;  %v830_v18 = vmax.f32 %v826_v60, 0.0  ;;  %v831_v26 = vmax.f32 %v827_v21, 0.0 }
 0x476   :  { %832 = vst [vmem:[#allocation7] sm:$0xff] %v828_v63 }
 0x477   :  { %833 = vst [vmem:[#allocation7 + $0x8] sm:$0xff] %v829_v2 }
 0x478   :  { %834 = vst [vmem:[#allocation7 + $0x10] sm:$0xff] %v830_v18 }
 0x479   :  { %835 = vst [vmem:[#allocation7 + $0x18] sm:$0xff] %v831_v26 }
 0x47a   :  { %848 = dma.vmem_to_hbm [thread:$0]  %s841_s10, 512, %s843_s30, [#allocation4], %s997_s25, %s997_s25, %s998_s26  }
 0x47b   :  { %994 = dma.done.wait [#allocation4], 512  }
 0x47c   :  { %995 = vsyncadd [#allocation4], 4294966784 }
 0x47d   :  { %853 = vsyncpa [#allocation3], 1 }
 0x47e   :  { %854 = vsyncpa [#allocation6], 1 }
 0x47f   :  { %855 = vsyncpa [#allocation4], 1 }

</bundles_post_ra>
